<compile_context>
chip_gen: v7x
topology: tpu7x:2x2x1
jax: 0.10.0
libtpu: 0.0.40
codegen_flags: <defaults>
</compile_context>

<pallas_src>
import functools

import jax
import jax.numpy as jnp
from jax.experimental import pallas as pl
from jax.experimental.pallas import tpu as pltpu


def _noise_kernel(x_ref, o_ref, *, mean, stdev, seed):
    tm, tl = x_ref.shape

    # Global element index of every lane in this tile (uint32 counter).
    base = pl.program_id(0).astype(jnp.uint32) * jnp.uint32(tm * tl)
    row = jax.lax.broadcasted_iota(jnp.int32, (tm, tl), 0).astype(jnp.uint32)
    col = jax.lax.broadcasted_iota(jnp.int32, (tm, tl), 1).astype(jnp.uint32)
    idx = base + row * jnp.uint32(tl) + col

    # Stateless hash of (seed, element index) -> well-mixed 32 random bits.
    z = idx + jnp.uint32(seed & 0xFFFFFFFF) * jnp.uint32(0x9E3779B9)
    z = z ^ (z >> jnp.uint32(16))
    z = z * jnp.uint32(0x7FEB352D)
    z = z ^ (z >> jnp.uint32(15))
    z = z * jnp.uint32(0x846CA68B)
    z = z ^ (z >> jnp.uint32(16))

    # Top 24 bits -> uniform float32 in [0, 1).  Go through int32 (value fits
    # in 24 bits) so the int->float convert is the well-supported signed path.
    mant = (z >> jnp.uint32(8)).astype(jnp.int32)
    u01 = mant.astype(jnp.float32) * jnp.float32(1.0 / (1 << 24))

    noise = u01 * jnp.float32(stdev) + jnp.float32(mean)
    # Compute the add in f32, cast once at the store.
    o_ref[...] = (x_ref[...].astype(jnp.float32) + noise).astype(o_ref.dtype)


def noise_forward(d_coarse, *, seed=0, mean=0.0, stdev=1.0,
                  lane=512, tile_rows=512):
    """Pallas equivalent of Noise.forward: d_coarse + (rand_like * stdev + mean)."""
    orig_shape = d_coarse.shape
    n = d_coarse.size
    flat = d_coarse.reshape(-1)

    # Lane-dense slab: last dim = `lane` (multiple of 128), pad the tail.
    L = int(lane)
    rows = -(-n // L)                       # ceil(n / L)
    TM = int(min(tile_rows, rows))
    if TM < rows:                           # keep sublane dim a multiple of 8
        TM = max(8, (TM // 8) * 8)
    rows_p = -(-rows // TM) * TM            # pad rows to a multiple of TM
    pad = rows_p * L - n
    if pad:
        flat = jnp.pad(flat, (0, pad))
    x2d = flat.reshape(rows_p, L)
    grid = (rows_p // TM,)

    kernel = functools.partial(
        _noise_kernel, mean=float(mean), stdev=float(stdev), seed=int(seed))

    # Note: input_output_aliases={0: 0} could donate x2d to the output if the
    # caller never needs the input again; omitted here to keep the call simple.
    out = pl.pallas_call(
        kernel,
        out_shape=jax.ShapeDtypeStruct(x2d.shape, x2d.dtype),
        grid=grid,
        in_specs=[pl.BlockSpec((TM, L), lambda i: (i, 0))],
        out_specs=pl.BlockSpec((TM, L), lambda i: (i, 0)),
        compiler_params=pltpu.CompilerParams(
            dimension_semantics=("parallel",)),
    )(x2d)

    if pad:
        out = out.reshape(-1)[:n]
    return out.reshape(orig_shape)


if __name__ == "__main__":
    key = jax.random.PRNGKey(0)
    # Shapes consistent with a 4-D NCHW activation tensor.
    x = jax.random.normal(key, (2, 4, 16, 16), dtype=jnp.float32)

    # Module was constructed with mean=0, stdev=1 (R_scale is unused).
    y = noise_forward(x, seed=0, mean=0.0, stdev=1.0)
    y = jax.block_until_ready(y)

    # Sanity checks: shape/dtype preserved, added noise lies in [0, 1].
    assert y.shape == x.shape and y.dtype == x.dtype
    noise = y - x
    assert bool(jnp.all(noise >= 0.0))
    assert bool(jnp.all(noise <= 1.0))
    assert abs(float(jnp.mean(noise)) - 0.5) < 0.1  # uniform mean sanity check

    print("KERNEL_OK")
</pallas_src>

<mosaic_0001>
module attributes {stable_mosaic.version = 11 : i64} {
  func.func @_noise_kernel(%arg0: i32, %arg1: memref<4x512xf32, #tpu.memory_space<vmem>>, %arg2: memref<4x512xf32, #tpu.memory_space<vmem>>) attributes {dimension_semantics = [#tpu.dimension_semantics<parallel>], iteration_bounds = array<i64: 1>, scalar_prefetch = 0 : i64, scratch_operands = 0 : i64, tpu.core_type = #tpu.core_type<tc>, window_params = [{transform_indices = @transform_0, window_bounds = array<i64: 4, 512>}, {transform_indices = @transform_1, window_bounds = array<i64: 4, 512>}]} {
    %c2048_i32 = arith.constant 2048 : i32
    %0 = arith.muli %arg0, %c2048_i32 : i32
    %1 = tpu.iota {dimensions = array<i32: 0>} : vector<4x512xi32>
    %2 = tpu.iota {dimensions = array<i32: 1>} : vector<4x512xi32>
    %c512_i32 = arith.constant 512 : i32
    %3 = vector.broadcast %c512_i32 : i32 to vector<4x512xi32>
    %4 = arith.muli %1, %3 : vector<4x512xi32>
    %5 = vector.broadcast %0 : i32 to vector<4x512xi32>
    %6 = arith.addi %5, %4 : vector<4x512xi32>
    %7 = arith.addi %6, %2 : vector<4x512xi32>
    %c0_i32 = arith.constant 0 : i32
    %c-1640531527_i32 = arith.constant -1640531527 : i32
    %8 = arith.muli %c0_i32, %c-1640531527_i32 : i32
    %9 = vector.broadcast %8 : i32 to vector<4x512xi32>
    %10 = arith.addi %7, %9 : vector<4x512xi32>
    %c16_i32 = arith.constant 16 : i32
    %11 = vector.broadcast %c16_i32 : i32 to vector<4x512xi32>
    %12 = arith.shrui %10, %11 : vector<4x512xi32>
    %13 = arith.xori %10, %12 : vector<4x512xi32>
    %c2146121005_i32 = arith.constant 2146121005 : i32
    %14 = vector.broadcast %c2146121005_i32 : i32 to vector<4x512xi32>
    %15 = arith.muli %13, %14 : vector<4x512xi32>
    %c15_i32 = arith.constant 15 : i32
    %16 = vector.broadcast %c15_i32 : i32 to vector<4x512xi32>
    %17 = arith.shrui %15, %16 : vector<4x512xi32>
    %18 = arith.xori %15, %17 : vector<4x512xi32>
    %c-2073254261_i32 = arith.constant -2073254261 : i32
    %19 = vector.broadcast %c-2073254261_i32 : i32 to vector<4x512xi32>
    %20 = arith.muli %18, %19 : vector<4x512xi32>
    %c16_i32_0 = arith.constant 16 : i32
    %21 = vector.broadcast %c16_i32_0 : i32 to vector<4x512xi32>
    %22 = arith.shrui %20, %21 : vector<4x512xi32>
    %23 = arith.xori %20, %22 : vector<4x512xi32>
    %c8_i32 = arith.constant 8 : i32
    %24 = vector.broadcast %c8_i32 : i32 to vector<4x512xi32>
    %25 = arith.shrui %23, %24 : vector<4x512xi32>
    %26 = arith.sitofp %25 : vector<4x512xi32> to vector<4x512xf32>
    %cst = arith.constant 5.96046448E-8 : f32
    %27 = vector.broadcast %cst : f32 to vector<4x512xf32>
    %28 = arith.mulf %26, %27 : vector<4x512xf32>
    %cst_1 = arith.constant 1.000000e+00 : f32
    %29 = vector.broadcast %cst_1 : f32 to vector<4x512xf32>
    %30 = arith.mulf %28, %29 : vector<4x512xf32>
    %cst_2 = arith.constant 0.000000e+00 : f32
    %31 = vector.broadcast %cst_2 : f32 to vector<4x512xf32>
    %32 = arith.addf %30, %31 : vector<4x512xf32>
    %c0 = arith.constant 0 : index
    %c0_3 = arith.constant 0 : index
    %33 = vector.load %arg1[%c0, %c0_3] : memref<4x512xf32, #tpu.memory_space<vmem>>, vector<4x512xf32>
    %34 = arith.addf %33, %32 : vector<4x512xf32>
    %c0_4 = arith.constant 0 : index
    %c0_5 = arith.constant 0 : index
    %35 = vector.load %arg2[%c0_4, %c0_5] : memref<4x512xf32, #tpu.memory_space<vmem>>, vector<4x512xf32>
    tpu.vector_store %arg2[%c0_4, %c0_5], %34 {strides = array<i32>} : memref<4x512xf32, #tpu.memory_space<vmem>>, vector<4x512xf32>,
    return
  }
  func.func @transform_0(%arg0: i32) -> (i32, i32) {
    %c0_i32 = arith.constant 0 : i32
    %c0_i32_0 = arith.constant 0 : i32
    return %arg0, %c0_i32 : i32, i32
  }
  func.func @transform_1(%arg0: i32) -> (i32, i32) {
    %c0_i32 = arith.constant 0 : i32
    %c0_i32_0 = arith.constant 0 : i32
    return %arg0, %c0_i32 : i32, i32
  }
}

</mosaic_0001>

<bundles_post_ra>
// kernel: tpu_custom_call.1
= control target key start
LH: loop header
LB: loop body
LE: loop exit
PB: predicated region body
PF: predicated region fallthrough
CT: control target
= control target key end

     0   :  { %6 = vsyncpa [#allocation3], 0  ;;  %s199_s0 = inlined_call_operand.hbm [shape: f32[4,512], index: 0, kind: input, shape index: {}]   ;;  %s200_s1 = inlined_call_operand.hbm [shape: f32[4,512], index: 1, kind: output, shape index: {}]  }
   0x1   :  { %7 = vsyncpa [#allocation4], 0  ;;  %s163_s6 = smov [#allocation2]   ;;  %s115_s10 = scalar_lea.hbm %s199_s0, 256 }
   0x2   :  { %s14_s7 = sshll.u32 %s163_s6, 4  ;;  %p116_p0 = scmp.ne.s32.totalorder %s199_s0, %s115_s10  ;;  %s15_s7 = int_to_ptr.vmem [resolvable:$true] %s14_s7 }
   0x3   :  { %p119_p1 = scmp.lt.u32.totalorder %s115_s10, %s199_s0 }
   0x5   :  { %p121_p2 = pnand %p119_p1, %p116_p0 }
   0x7   :  { %124 = shalt.err (!%p121_p2)
}
   0x8   :  { %s125_s15 = scalar_lea.vmem %s15_s7, 256  ;;  %p130_p4 = scmp.lt.s32.totalorder %s15_s7, %s15_s7 }
   0x9   :  { %p126_p3 = scmp.ne.s32.totalorder %s15_s7, %s125_s15  ;;  %p131_p5 = scmp.lt.s32.totalorder %s125_s15, %s125_s15 }
   0xb   :  { %p132_p6 = por %p131_p5, %p130_p4 }
   0xd   :  { %p133_p7 = pnand %p132_p6, %p126_p3 }
   0xf   :  { %136 = shalt.err (!%p133_p7)
}
  0x10   :  { %17 = dma.hbm_to_vmem [thread:$0]  %s199_s0, 256, %s15_s7, [#allocation3]  }
  0x11   :  { %159 = dma.done.wait [#allocation3], 256  }
  0x12   :  { %160 = vsyncadd [#allocation3], 4294967040  ;;  %v22_v0 = vlaneseq  ;;  %v84_v53 = vld [vmem:[#allocation2] sm:$0xff]  ;;  %v85_v57 = vld [vmem:[#allocation2 + $0x8] sm:$0xff]  ;;  %s164_s0 = smov [#allocation5]  }
  0x13   :  { %s104_s18 = sshll.u32 %s164_s0, 4  ;;  %s105_s18 = int_to_ptr.vmem [resolvable:$true] %s104_s18 }
  0x14   :  { %v23_v1 = vshrl.u32 %v22_v0, 7  ;;  %v25_v2 = vand.u32 127, %v22_v0  ;;  %s137_s19 = scalar_lea.vmem %s105_s18, 256  ;;  %p142_p9 = scmp.lt.s32.totalorder %s105_s18, %s105_s18 }
  0x15   :  { %p138_p8 = scmp.ne.s32.totalorder %s105_s18, %s137_s19  ;;  %p143_p10 = scmp.lt.s32.totalorder %s137_s19, %s137_s19 }
  0x16   :  { %v26_v3 = vadd.s32 128, %v25_v2  ;;  %v29_v4 = vmul.u32 512, %v23_v1  ;;  %v27_v5 = vadd.s32 256, %v25_v2  ;;  %v28_v6 = vadd.s32 384, %v25_v2 }
  0x17   :  { %p144_p11 = por %p143_p10, %p142_p9 }
  0x18   :  { %v32_v7 = vadd.s32 %v29_v4, %v25_v2  ;;  %v33_v8 = vadd.s32 %v29_v4, %v26_v3  ;;  %v34_v9 = vadd.s32 %v29_v4, %v27_v5  ;;  %v35_v10 = vadd.s32 %v29_v4, %v28_v6 }
  0x19   :  { %p145_p12 = pnand %p144_p11, %p138_p8 }
  0x1a   :  { %v36_v11 = vshrl.u32 %v32_v7, 16  ;;  %v37_v12 = vshrl.u32 %v33_v8, 16  ;;  %v38_v13 = vshrl.u32 %v34_v9, 16  ;;  %v39_v14 = vshrl.u32 %v35_v10, 16 }
  0x1c   :  { %v40_v15 = vxor.u32 %v36_v11, %v32_v7  ;;  %v41_v16 = vxor.u32 %v37_v12, %v33_v8  ;;  %v42_v17 = vxor.u32 %v38_v13, %v34_v9  ;;  %v43_v18 = vxor.u32 %v39_v14, %v35_v10 }
  0x1e   :  { %v44_v19 = vmul.u32 2146121005, %v40_v15  ;;  %v45_v20 = vmul.u32 2146121005, %v41_v16 }
  0x1f   :  { %v46_v21 = vmul.u32 2146121005, %v42_v17  ;;  %v47_v22 = vmul.u32 2146121005, %v43_v18 }
  0x20   :  { %v48_v23 = vshrl.u32 %v44_v19, 15  ;;  %v49_v24 = vshrl.u32 %v45_v20, 15 }
  0x21   :  { %v50_v25 = vshrl.u32 %v46_v21, 15  ;;  %v51_v26 = vshrl.u32 %v47_v22, 15 }
  0x22   :  { %v52_v27 = vxor.u32 %v48_v23, %v44_v19  ;;  %v53_v28 = vxor.u32 %v49_v24, %v45_v20 }
  0x23   :  { %v54_v29 = vxor.u32 %v50_v25, %v46_v21  ;;  %v55_v30 = vxor.u32 %v51_v26, %v47_v22 }
  0x24   :  { %v56_v31 = vmul.u32 2221713035, %v52_v27  ;;  %v57_v32 = vmul.u32 2221713035, %v53_v28 }
  0x25   :  { %v58_v33 = vmul.u32 2221713035, %v54_v29  ;;  %v59_v34 = vmul.u32 2221713035, %v55_v30 }
  0x26   :  { %v60_v35 = vshrl.u32 %v56_v31, 16  ;;  %v61_v36 = vshrl.u32 %v57_v32, 16 }
  0x27   :  { %v62_v37 = vshrl.u32 %v58_v33, 16  ;;  %v63_v38 = vshrl.u32 %v59_v34, 16 }
  0x28   :  { %v64_v39 = vxor.u32 %v60_v35, %v56_v31  ;;  %v65_v40 = vxor.u32 %v61_v36, %v57_v32 }
  0x29   :  { %v66_v41 = vxor.u32 %v62_v37, %v58_v33  ;;  %v67_v42 = vxor.u32 %v63_v38, %v59_v34 }
  0x2a   :  { %v68_v43 = vshrl.u32 %v64_v39, 8  ;;  %v69_v44 = vshrl.u32 %v65_v40, 8 }
  0x2b   :  { %v70_v45 = vshrl.u32 %v66_v41, 8  ;;  %v71_v46 = vshrl.u32 %v67_v42, 8 }
  0x2c   :  { %v72_v47 = vcvt.s32.f32 %v68_v43  ;;  %v73_v48 = vcvt.s32.f32 %v69_v44 }
  0x2d   :  { %v74_v49 = vcvt.s32.f32 %v70_v45  ;;  %v75_v50 = vcvt.s32.f32 %v71_v46 }
  0x2e   :  { %v76_v51 = vmul.f32 5.9604645e-08, %v72_v47  ;;  %v77_v52 = vmul.f32 5.9604645e-08, %v73_v48 }
  0x2f   :  { %v78_v54 = vmul.f32 5.9604645e-08, %v74_v49  ;;  %v79_v55 = vmul.f32 5.9604645e-08, %v75_v50 }
  0x30   :  { %v90_v56 = vcombine.low %v76_v51, %v77_v52 }
  0x31   :  { %v91_v58 = vcombine.low %v78_v54, %v79_v55 }
  0x32   :  { %v94_v59 = vadd.f32 %v90_v56, %v84_v53 }
  0x33   :  { %v95_v60 = vadd.f32 %v91_v58, %v85_v57 }
  0x34   :  { %96 = vst [vmem:[#allocation5] sm:$0xff] %v94_v59 }
  0x35   :  { %97 = vst [vmem:[#allocation5 + $0x8] sm:$0xff] %v95_v60 }
  0x36   :  { %148 = shalt.err (!%p145_p12)
}
  0x37   :  { %s149_s22 = scalar_lea.hbm %s200_s1, 256 }
  0x38   :  { %p150_p13 = scmp.ne.s32.totalorder %s200_s1, %s149_s22  ;;  %p153_p0 = scmp.lt.u32.totalorder %s149_s22, %s200_s1 }
  0x3a   :  { %p155_p1 = pnand %p153_p0, %p150_p13 }
  0x3c   :  { %158 = shalt.err (!%p155_p1)
}
  0x3d   :  { %107 = dma.vmem_to_hbm [thread:$0]  %s105_s18, 256, %s200_s1, [#allocation4]  }
  0x3e   :  { %161 = dma.done.wait [#allocation4], 256  }
  0x3f   :  { %162 = vsyncadd [#allocation4], 4294967040 }
  0x40   :  { %111 = vsyncpa [#allocation3], 1 }
  0x41   :  { %112 = vsyncpa [#allocation4], 1 }

</bundles_post_ra>
